<compile_context>
chip_gen: v6e
topology: v6e:2x2x1
jax: 0.10.0
libtpu: 0.0.40
codegen_flags: <defaults>
</compile_context>

<pallas_src>
import jax
import jax.numpy as jnp
from jax import lax
from jax.experimental import pallas as pl
from jax.experimental.pallas import tpu as pltpu

EPS = 1e-5  # nn.InstanceNorm2d default eps, affine=False


def convtrans_in_relu_kernel(p_ref, w_ref, o_ref):
    # p_ref: (1, K*K*Cin, Ho*Wo)  im2col of dilated+padded input, one sample
    # w_ref: (Cout, K*K*Cin)      flipped transposed-conv weights, matmul form
    # o_ref: (1, Cout, Ho*Wo)     lane-dense output slab
    # One MXU matmul: (Cout, KKC) @ (KKC, HoWo) accumulated in f32.
    acc = jnp.dot(w_ref[...], p_ref[0], preferred_element_type=jnp.float32)

    # InstanceNorm2d (affine=False): per-(sample, channel) stats over all
    # spatial positions (lane reduction), biased variance.
    mean = jnp.mean(acc, axis=1, keepdims=True)          # (Cout, 1)
    cen = acc - mean
    var = jnp.mean(cen * cen, axis=1, keepdims=True)     # (Cout, 1)
    normed = cen * lax.rsqrt(var + EPS)

    # ReLU, lane-dense store.
    o_ref[...] = jnp.maximum(normed, 0.0).reshape(o_ref.shape)


def conv_trans_block(x_nchw, weight, bias, *, stride, padding):
    """ConvTranspose2d(weight, bias, stride, padding) + InstanceNorm2d + ReLU.

    x_nchw: (N, Cin, H, W)
    weight: (Cin, Cout, K, K)   (PyTorch ConvTranspose2d layout)
    bias:   (Cout,)             (unused: cancels under affine=False InstanceNorm)
    returns (N, Cout, Ho, Wo)
    """
    del bias  # mathematically a no-op under InstanceNorm2d(affine=False)
    N, Cin, H, W = x_nchw.shape
    _, Cout, K, _ = weight.shape
    s, p = stride, padding
    Ho = (H - 1) * s - 2 * p + K
    Wo = (W - 1) * s - 2 * p + K

    # --- wrapper glue (plain JAX/XLA): dilate, pad, im2col, weight reshape ---
    x32 = x_nchw.astype(jnp.float32)                      # already channel-major
    Hd, Wd = (H - 1) * s + 1, (W - 1) * s + 1
    x_dil = jnp.zeros((N, Cin, Hd, Wd), jnp.float32).at[:, :, ::s, ::s].set(x32)
    pad = K - 1 - p
    x_pad = jnp.pad(x_dil, ((0, 0), (0, 0), (pad, pad), (pad, pad)))

    # im2col over the K*K taps: P[n, (kh*K+kw)*Cin + ci, oh*Wo + ow]
    #                             = x_pad[n, ci, oh+kh, ow+kw]
    patches = jnp.stack(
        [x_pad[:, :, kh:kh + Ho, kw:kw + Wo] for kh in range(K) for kw in range(K)],
        axis=1)                                           # (N, K*K, Cin, Ho, Wo)
    KKC, HW = K * K * Cin, Ho * Wo
    P = patches.reshape(N, KKC, HW)

    # flipped kernel in matmul form: wmat[co, (kh*K+kw)*Cin + ci]
    #   = weight[ci, co, K-1-kh, K-1-kw]
    w_f = jnp.transpose(weight[:, :, ::-1, ::-1], (2, 3, 0, 1)).astype(jnp.float32)
    wmat = jnp.transpose(w_f.reshape(KKC, Cout))          # (Cout, KKC)

    out = pl.pallas_call(
        convtrans_in_relu_kernel,
        out_shape=jax.ShapeDtypeStruct((N, Cout, HW), jnp.float32),
        grid=(N,),
        in_specs=[
            pl.BlockSpec((1, KKC, HW), lambda n: (n, 0, 0)),
            pl.BlockSpec((Cout, KKC), lambda n: (0, 0)),
        ],
        out_specs=pl.BlockSpec((1, Cout, HW), lambda n: (n, 0, 0)),
        compiler_params=pltpu.CompilerParams(dimension_semantics=("parallel",)),
    )(P, wmat)

    # Free reshape (row-major contiguous) to NCHW; no transpose needed.
    return out.reshape(N, Cout, Ho, Wo)


def ref_forward(x, weight, bias, *, stride, padding):
    """Pure-JAX reference of the same forward pass (for verification)."""
    s, p = stride, padding
    _, Cout, K, _ = weight.shape
    w_conv = jnp.transpose(weight[:, :, ::-1, ::-1], (1, 0, 2, 3))  # (Cout, Cin, K, K)
    y = lax.conv_general_dilated(
        x.astype(jnp.float32), w_conv.astype(jnp.float32),
        window_strides=(1, 1),
        padding=[(K - 1 - p, K - 1 - p)] * 2,
        lhs_dilation=(s, s),
        dimension_numbers=("NCHW", "OIHW", "NCHW"),
    )
    y = y + bias[None, :, None, None]
    mean = jnp.mean(y, axis=(2, 3), keepdims=True)
    var = jnp.mean((y - mean) ** 2, axis=(2, 3), keepdims=True)
    y = (y - mean) * lax.rsqrt(var + EPS)
    return jnp.maximum(y, 0.0)


if __name__ == "__main__":
    # ConvTransBlock(in_channels=4, out_channels=8, kernel_size=4, stride=2, padding=1)
    N, Cin, H, W = 2, 4, 16, 16
    Cout, K, STRIDE, PAD = 8, 4, 2, 1

    key = jax.random.PRNGKey(0)
    kx, kw, kb = jax.random.split(key, 3)
    x = jax.random.normal(kx, (N, Cin, H, W), jnp.float32)
    fan_in = Cin * K * K
    bound = 1.0 / (fan_in ** 0.5)
    weight = jax.random.uniform(kw, (Cin, Cout, K, K), jnp.float32, -bound, bound)
    bias = jax.random.uniform(kb, (Cout,), jnp.float32, -bound, bound)

    fwd = jax.jit(lambda xx, ww, bb: conv_trans_block(xx, ww, bb,
                                                      stride=STRIDE, padding=PAD))
    out = jax.block_until_ready(fwd(x, weight, bias))

    ref = ref_forward(x, weight, bias, stride=STRIDE, padding=PAD)
    Ho = (H - 1) * STRIDE - 2 * PAD + K
    Wo = (W - 1) * STRIDE - 2 * PAD + K
    assert out.shape == (N, Cout, Ho, Wo)
    assert jnp.allclose(out, ref, atol=1e-4, rtol=1e-4), (
        float(jnp.max(jnp.abs(out - ref)))
    )
    print("KERNEL_OK")
</pallas_src>

<mosaic_0001>
module attributes {stable_mosaic.version = 11 : i64} {
  func.func @convtrans_in_relu_kernel(%arg0: i32, %arg1: memref<1x64x1024xf32, #tpu.memory_space<vmem>>, %arg2: memref<8x64xf32, #tpu.memory_space<vmem>>, %arg3: memref<1x8x1024xf32, #tpu.memory_space<vmem>>) attributes {dimension_semantics = [#tpu.dimension_semantics<parallel>], iteration_bounds = array<i64: 2>, scalar_prefetch = 0 : i64, scratch_operands = 0 : i64, tpu.core_type = #tpu.core_type<tc>, window_params = [{transform_indices = @transform_0, window_bounds = array<i64: 1, 64, 1024>}, {pipeline_mode = #tpu.pipeline_mode<synchronous>, transform_indices = @transform_1, window_bounds = array<i64: 8, 64>}, {transform_indices = @transform_2, window_bounds = array<i64: 1, 8, 1024>}]} {
    %c0 = arith.constant 0 : index
    %c0_0 = arith.constant 0 : index
    %0 = vector.load %arg2[%c0, %c0_0] : memref<8x64xf32, #tpu.memory_space<vmem>>, vector<8x64xf32>
    %c0_1 = arith.constant 0 : index
    %c0_2 = arith.constant 0 : index
    %c0_3 = arith.constant 0 : index
    %1 = vector.load %arg1[%c0_1, %c0_2, %c0_3] : memref<1x64x1024xf32, #tpu.memory_space<vmem>>, vector<1x64x1024xf32>
    %2 = vector.shape_cast %1 : vector<1x64x1024xf32> to vector<64x1024xf32>
    %cst = arith.constant dense<0.000000e+00> : vector<8x1024xf32>
    %3 = tpu.matmul %0, %2, %cst {dimension_numbers = #tpu.dot_dimension_numbers<[1], [0], [0], [1], [0, 0, 1, 1], [], []>} : vector<8x64xf32>, vector<64x1024xf32>, vector<8x1024xf32> -> vector<8x1024xf32>
    %cst_4 = arith.constant dense<0.000000e+00> : vector<8xf32>
    %4 = vector.multi_reduction <add>, %3, %cst_4 [1] : vector<8x1024xf32> to vector<8xf32>
    %5 = vector.shape_cast %4 : vector<8xf32> to vector<8x1xf32>
    %cst_5 = arith.constant 1.024000e+03 : f32
    %6 = vector.broadcast %cst_5 : f32 to vector<8x1xf32>
    %7 = arith.divf %5, %6 : vector<8x1xf32>
    %8 = vector.broadcast %7 : vector<8x1xf32> to vector<8x1024xf32>
    %9 = arith.subf %3, %8 : vector<8x1024xf32>
    %10 = arith.mulf %9, %9 : vector<8x1024xf32>
    %cst_6 = arith.constant dense<0.000000e+00> : vector<8xf32>
    %11 = vector.multi_reduction <add>, %10, %cst_6 [1] : vector<8x1024xf32> to vector<8xf32>
    %12 = vector.shape_cast %11 : vector<8xf32> to vector<8x1xf32>
    %cst_7 = arith.constant 1.024000e+03 : f32
    %13 = vector.broadcast %cst_7 : f32 to vector<8x1xf32>
    %14 = arith.divf %12, %13 : vector<8x1xf32>
    %cst_8 = arith.constant 9.99999974E-6 : f32
    %15 = vector.broadcast %cst_8 : f32 to vector<8x1xf32>
    %16 = arith.addf %14, %15 : vector<8x1xf32>
    %17 = math.rsqrt %16 : vector<8x1xf32>
    %18 = vector.broadcast %17 : vector<8x1xf32> to vector<8x1024xf32>
    %19 = arith.mulf %9, %18 : vector<8x1024xf32>
    %cst_9 = arith.constant 0.000000e+00 : f32
    %20 = vector.broadcast %cst_9 : f32 to vector<8x1024xf32>
    %21 = arith.maximumf %19, %20 : vector<8x1024xf32>
    %22 = vector.shape_cast %21 : vector<8x1024xf32> to vector<1x8x1024xf32>
    %c0_10 = arith.constant 0 : index
    %c0_11 = arith.constant 0 : index
    %c0_12 = arith.constant 0 : index
    %23 = vector.load %arg3[%c0_10, %c0_11, %c0_12] : memref<1x8x1024xf32, #tpu.memory_space<vmem>>, vector<1x8x1024xf32>
    tpu.vector_store %arg3[%c0_10, %c0_11, %c0_12], %22 {strides = array<i32>} : memref<1x8x1024xf32, #tpu.memory_space<vmem>>, vector<1x8x1024xf32>,
    return
  }
  func.func @transform_0(%arg0: i32) -> (i32, i32, i32) {
    %c0_i32 = arith.constant 0 : i32
    %c0_i32_0 = arith.constant 0 : i32
    %c0_i32_1 = arith.constant 0 : i32
    return %arg0, %c0_i32, %c0_i32_0 : i32, i32, i32
  }
  func.func @transform_1(%arg0: i32) -> (i32, i32) {
    %c0_i32 = arith.constant 0 : i32
    %c0_i32_0 = arith.constant 0 : i32
    %c0_i32_1 = arith.constant 0 : i32
    return %c0_i32, %c0_i32_0 : i32, i32
  }
  func.func @transform_2(%arg0: i32) -> (i32, i32, i32) {
    %c0_i32 = arith.constant 0 : i32
    %c0_i32_0 = arith.constant 0 : i32
    %c0_i32_1 = arith.constant 0 : i32
    return %arg0, %c0_i32, %c0_i32_0 : i32, i32, i32
  }
}

</mosaic_0001>

<bundles_post_ra>
// kernel: _lambda_.1
= control target key start
LH: loop header
LB: loop body
LE: loop exit
PB: predicated region body
PF: predicated region fallthrough
CT: control target
= control target key end

     0   :  { %s667_s9 = smov 0   ;;  %s771_s0 = inlined_call_operand.vmem [shape: f32[2,64,1024], index: 0, kind: input, shape index: {}]   ;;  %s772_s1 = inlined_call_operand.vmem [shape: f32[8,64], index: 1, kind: input, shape index: {}]   ;;  %s773_s2 = inlined_call_operand.vmem [shape: f32[2,8,1024], index: 2, kind: output, shape index: {}]  }
   0x1 LB: > { %s615_s10 = sadd.s32 4294967295, %s649_s9   ;;  %p619_p0 = scmp.ge.s32.totalorder %s649_s9, 1  ;;  %s649_s9 = sphi %s667_s9, %s12_s9  }
   0x2   : > { %p112_p1 = scmp.lt.s32.totalorder %s649_s9, 3 }
   0x4   : > { %p113_p2 = pnand %p619_p0, %p112_p1 }
   0x5   : > { %p134_p3 = scmp.lt.s32.totalorder (!%p113_p2), %s615_s10, 1 }
   0x6   : > { %116 = sbr.rel (%p113_p2) target bundleno = 570 (0x23a), region = 28 }
   0xb   : > { %v651_v0 = vmov 0.0   ;;  %s775_s10 = smov (!%p134_p3, %s615_s10), 1  ;;  %v719_v32 = vld [vmem:[%s772_s1] sm:$0xff]  ;;  %vm209_vm0 = vcmask 523264  }
   0xc   : > { %277 = vmatprep.mubr.f32.mxu0 %v651_v0  ;;  %348 = vmatprep.mubr.f32.mxu1 %v651_v0  ;;  %s630_s11 = sshll.u32 %s775_s10, 9  ;;  %s631_s17 = sshll.u32 %s775_s10, 6 }
   0xd   : > { %s683_s14 = scalar_lea.vmem %s771_s0, %s630_s11  ;;  %s143_s20 = scalar_lea.vmem %s773_s2, %s631_s17 }
   0xe   : > { %v202_v1 = vld [vmem:[%s683_s14 + $0x1c8] sm:$0xff]  ;;  %v201_v2 = vld [vmem:[%s683_s14 + $0x1c0] sm:$0xff]  ;;  %v204_v4 = vld [vmem:[%s683_s14 + $0x1d8] sm:$0xff] }
   0xf   : > { %v194_v3 = vld [vmem:[%s683_s14 + $0x188] sm:$0xff]  ;;  %229 = vmatprep.subr.mxu0 %v202_v1  ;;  %v193_v5 = vld [vmem:[%s683_s14 + $0x180] sm:$0xff]  ;;  %v203_v6 = vld [vmem:[%s683_s14 + $0x1d0] sm:$0xff]  ;;  %300 = vmatprep.subr.mxu1 %v204_v4 }
  0x10   : > { %230 = vmatpush1.msra.mxu0 %v201_v2  ;;  %v186_v7 = vld [vmem:[%s683_s14 + $0x148] sm:$0xff]  ;;  %v196_v8 = vld [vmem:[%s683_s14 + $0x198] sm:$0xff]  ;;  %301 = vmatpush1.msra.mxu1 %v203_v6  ;;  %v185_v9 = vld [vmem:[%s683_s14 + $0x140] sm:$0xff] }
  0x11   : > { %231 = vmatprep.subr.mxu0 %v194_v3  ;;  %v195_v10 = vld [vmem:[%s683_s14 + $0x190] sm:$0xff]  ;;  %v188_v11 = vld [vmem:[%s683_s14 + $0x158] sm:$0xff]  ;;  %302 = vmatprep.subr.mxu1 %v196_v8  ;;  %v178_v12 = vld [vmem:[%s683_s14 + $0x108] sm:$0xff] }
  0x12   : > { %232 = vmatpush1.msra.mxu0 %v193_v5  ;;  %v187_v13 = vld [vmem:[%s683_s14 + $0x150] sm:$0xff]  ;;  %303 = vmatpush1.msra.mxu1 %v195_v10  ;;  %v177_v14 = vld [vmem:[%s683_s14 + $0x100] sm:$0xff]  ;;  %v180_v15 = vld [vmem:[%s683_s14 + $0x118] sm:$0xff] }
  0x13   : > { %233 = vmatprep.subr.mxu0 %v186_v7  ;;  %304 = vmatprep.subr.mxu1 %v188_v11  ;;  %v170_v16 = vld [vmem:[%s683_s14 + $0xc8] sm:$0xff]  ;;  %v179_v17 = vld [vmem:[%s683_s14 + $0x110] sm:$0xff]  ;;  %v169_v18 = vld [vmem:[%s683_s14 + $0xc0] sm:$0xff] }
  0x14   : > { %234 = vmatpush1.msra.mxu0 %v185_v9  ;;  %305 = vmatpush1.msra.mxu1 %v187_v13  ;;  %v172_v19 = vld [vmem:[%s683_s14 + $0xd8] sm:$0xff]  ;;  %v162_v20 = vld [vmem:[%s683_s14 + $0x88] sm:$0xff]  ;;  %v171_v21 = vld [vmem:[%s683_s14 + $0xd0] sm:$0xff] }
  0x15   : > { %235 = vmatprep.subr.mxu0 %v178_v12  ;;  %306 = vmatprep.subr.mxu1 %v180_v15  ;;  %v161_v22 = vld [vmem:[%s683_s14 + $0x80] sm:$0xff]  ;;  %v164_v23 = vld [vmem:[%s683_s14 + $0x98] sm:$0xff]  ;;  %v154_v24 = vld [vmem:[%s683_s14 + $0x48] sm:$0xff] }
  0x16   : > { %236 = vmatpush1.msra.mxu0 %v177_v14  ;;  %307 = vmatpush1.msra.mxu1 %v179_v17  ;;  %v163_v25 = vld [vmem:[%s683_s14 + $0x90] sm:$0xff]  ;;  %v153_v26 = vld [vmem:[%s683_s14 + $0x40] sm:$0xff]  ;;  %v156_v27 = vld [vmem:[%s683_s14 + $0x58] sm:$0xff] }
  0x17   : > { %237 = vmatprep.subr.mxu0 %v170_v16  ;;  %308 = vmatprep.subr.mxu1 %v172_v19  ;;  %v146_v28 = vld [vmem:[%s683_s14 + $0x8] sm:$0xff]  ;;  %v155_v29 = vld [vmem:[%s683_s14 + $0x50] sm:$0xff]  ;;  %v145_v30 = vld [vmem:[%s683_s14] sm:$0xff] }
  0x18   : > { %238 = vmatpush1.msra.mxu0 %v169_v18  ;;  %309 = vmatpush1.msra.mxu1 %v171_v21  ;;  %v148_v31 = vld [vmem:[%s683_s14 + $0x18] sm:$0xff]  ;;  %v206_v33 = vld [vmem:[%s683_s14 + $0x1e8] sm:$0xff]  ;;  %v147_v34 = vld [vmem:[%s683_s14 + $0x10] sm:$0xff] }
  0x19   : > { %239 = vmatprep.subr.mxu0 %v162_v20  ;;  %310 = vmatprep.subr.mxu1 %v164_v23  ;;  %v205_v35 = vld [vmem:[%s683_s14 + $0x1e0] sm:$0xff]  ;;  %v198_v36 = vld [vmem:[%s683_s14 + $0x1a8] sm:$0xff]  ;;  %v208_v37 = vld [vmem:[%s683_s14 + $0x1f8] sm:$0xff] }
  0x1a   : > { %240 = vmatpush1.msra.mxu0 %v161_v22  ;;  %311 = vmatpush1.msra.mxu1 %v163_v25  ;;  %v197_v38 = vld [vmem:[%s683_s14 + $0x1a0] sm:$0xff]  ;;  %v207_v39 = vld [vmem:[%s683_s14 + $0x1f0] sm:$0xff]  ;;  %v190_v40 = vld [vmem:[%s683_s14 + $0x168] sm:$0xff] }
  0x1b   : > { %241 = vmatprep.subr.mxu0 %v154_v24  ;;  %312 = vmatprep.subr.mxu1 %v156_v27  ;;  %v200_v41 = vld [vmem:[%s683_s14 + $0x1b8] sm:$0xff]  ;;  %v189_v42 = vld [vmem:[%s683_s14 + $0x160] sm:$0xff]  ;;  %v199_v43 = vld [vmem:[%s683_s14 + $0x1b0] sm:$0xff] }
  0x1c   : > { %242 = vmatpush1.msra.mxu0 %v153_v26  ;;  %313 = vmatpush1.msra.mxu1 %v155_v29  ;;  %v182_v44 = vld [vmem:[%s683_s14 + $0x128] sm:$0xff]  ;;  %v192_v45 = vld [vmem:[%s683_s14 + $0x178] sm:$0xff]  ;;  %v181_v46 = vld [vmem:[%s683_s14 + $0x120] sm:$0xff] }
  0x1d   : > { %243 = vmatprep.subr.mxu0 %v146_v28  ;;  %314 = vmatprep.subr.mxu1 %v148_v31  ;;  %v191_v47 = vld [vmem:[%s683_s14 + $0x170] sm:$0xff]  ;;  %v174_v48 = vld [vmem:[%s683_s14 + $0xe8] sm:$0xff]  ;;  %v184_v49 = vld [vmem:[%s683_s14 + $0x138] sm:$0xff] }
  0x1e   : > { %244 = vmatpush1.msra.mxu0 %v145_v30  ;;  %315 = vmatpush1.msra.mxu1 %v147_v34  ;;  %v173_v50 = vld [vmem:[%s683_s14 + $0xe0] sm:$0xff]  ;;  %v183_v51 = vld [vmem:[%s683_s14 + $0x130] sm:$0xff]  ;;  %v166_v52 = vld [vmem:[%s683_s14 + $0xa8] sm:$0xff] }
  0x1f   : > { %624 = vmatmul.mubr.msk.f32.vlgmr.msra.gmra.mxu0 %vm209_vm0, %v719_v32  ;;  %371 = vmatprep.subr.mxu0 %v206_v33  ;;  %v176_v53 = vld [vmem:[%s683_s14 + $0xf8] sm:$0xff]  ;;  %v165_v54 = vld [vmem:[%s683_s14 + $0xa0] sm:$0xff]  ;;  %v175_v55 = vld [vmem:[%s683_s14 + $0xf0] sm:$0xff] }
  0x20   : > { %372 = vmatpush1.msra.mxu0 %v205_v35  ;;  %442 = vmatprep.subr.mxu1 %v208_v37  ;;  %v158_v56 = vld [vmem:[%s683_s14 + $0x68] sm:$0xff]  ;;  %v168_v57 = vld [vmem:[%s683_s14 + $0xb8] sm:$0xff]  ;;  %v157_v58 = vld [vmem:[%s683_s14 + $0x60] sm:$0xff] }
  0x21   : > { %373 = vmatprep.subr.mxu0 %v198_v36  ;;  %625 = vmatmul.mubr.msk.f32.vlgmr.msra.gmra.mxu1 %vm209_vm0, %v719_v32  ;;  %v167_v59 = vld [vmem:[%s683_s14 + $0xb0] sm:$0xff]  ;;  %v150_v60 = vld [vmem:[%s683_s14 + $0x28] sm:$0xff]  ;;  %v160_v61 = vld [vmem:[%s683_s14 + $0x78] sm:$0xff] }
  0x22   : > { %374 = vmatpush1.msra.mxu0 %v197_v38  ;;  %443 = vmatpush1.msra.mxu1 %v207_v39  ;;  %v149_v62 = vld [vmem:[%s683_s14 + $0x20] sm:$0xff]  ;;  %v159_v63 = vld [vmem:[%s683_s14 + $0x70] sm:$0xff]  ;;  %v152_v1 = vld [vmem:[%s683_s14 + $0x38] sm:$0xff] }
  0x23   : > { %375 = vmatprep.subr.mxu0 %v190_v40  ;;  %444 = vmatprep.subr.mxu1 %v200_v41  ;;  %v151_v2 = vld [vmem:[%s683_s14 + $0x30] sm:$0xff] }
  0x24   : > { %376 = vmatpush1.msra.mxu0 %v189_v42  ;;  %445 = vmatpush1.msra.mxu1 %v199_v43 }
  0x25   : > { %377 = vmatprep.subr.mxu0 %v182_v44  ;;  %446 = vmatprep.subr.mxu1 %v192_v45 }
  0x26   : > { %378 = vmatpush1.msra.mxu0 %v181_v46  ;;  %447 = vmatpush1.msra.mxu1 %v191_v47 }
  0x27   : > { %379 = vmatprep.subr.mxu0 %v174_v48  ;;  %448 = vmatprep.subr.mxu1 %v184_v49 }
  0x28   : > { %380 = vmatpush1.msra.mxu0 %v173_v50  ;;  %449 = vmatpush1.msra.mxu1 %v183_v51 }
  0x29   : > { %381 = vmatprep.subr.mxu0 %v166_v52  ;;  %450 = vmatprep.subr.mxu1 %v176_v53 }
  0x2a   : > { %382 = vmatpush1.msra.mxu0 %v165_v54  ;;  %451 = vmatpush1.msra.mxu1 %v175_v55 }
  0x2b   : > { %383 = vmatprep.subr.mxu0 %v158_v56  ;;  %452 = vmatprep.subr.mxu1 %v168_v57 }
  0x2c   : > { %384 = vmatpush1.msra.mxu0 %v157_v58  ;;  %453 = vmatpush1.msra.mxu1 %v167_v59 }
  0x2d   : > { %385 = vmatprep.subr.mxu0 %v150_v60  ;;  %454 = vmatprep.subr.mxu1 %v160_v61 }
  0x2e   : > { %386 = vmatpush1.msra.mxu0 %v149_v62  ;;  %419 = vmatprep.mubr.f32.mxu0 %v651_v0 }
  0x2f   : > { %455 = vmatpush1.msra.mxu1 %v159_v63  ;;  %626 = vmatmul.mubr.msk.f32.vlgmr.msra.gmra.mxu0 %vm209_vm0, %v719_v32 }
  0x30   : > { %456 = vmatprep.subr.mxu1 %v152_v1  ;;  %490 = vmatprep.mubr.f32.mxu1 %v651_v0 }
  0x31   : > { %457 = vmatpush1.msra.mxu1 %v151_v2 }
  0x32   : > { %627 = vmatmul.mubr.msk.f32.vlgmr.msra.gmra.mxu1 %vm209_vm0, %v719_v32 }
  0xdf   : > { %v279_v3 = vpop.f32.mrf.mxu0 }
  0xe1   : > { %v281_v4 = vpop.f32.mrf.mxu0  ;;  %v350_v6 = vpop.f32.mrf.mxu1 }
  0xe2   : > { %v497_v5 = vadd.f32 %v281_v4, %v279_v3 }
  0xe3   : > { %v352_v8 = vpop.f32.mrf.mxu1 }
  0xe4   : > { %v498_v7 = vadd.f32 %v497_v5, %v350_v6 }
  0xe6   : > { %v499_v9 = vadd.f32 %v498_v7, %v352_v8 }
  0xef   : > { %v421_v10 = vpop.f32.mrf.mxu0 }
  0xf0   : > { %v500_v11 = vadd.f32 %v499_v9, %v421_v10 }
  0xf1   : > { %v423_v12 = vpop.f32.mrf.mxu0 }
  0xf2   : > { %v492_v13 = vpop.f32.mrf.mxu1  ;;  %v501_v14 = vadd.f32 %v500_v11, %v423_v12 }
  0xf4   : > { %v502_v15 = vadd.f32 %v501_v14, %v492_v13  ;;  %v494_v16 = vpop.f32.mrf.mxu1 }
  0xf6   : > { %v503_v17 = vadd.f32 %v502_v15, %v494_v16 }
  0xf8   : > { %504 = vadd.xlane.f32.xlu0 %v503_v17 }
 0x181   : > { %v505_v0 = vpop.xlane.xlu0 %504 }
 0x182   : > { %v507_v18 = vmul.f32 0.0009765625, %v505_v0 }
 0x184   : > { %v508_v19 = vsub.f32 %v279_v3, %v507_v18  ;;  %v509_v20 = vsub.f32 %v281_v4, %v507_v18  ;;  %v510_v21 = vsub.f32 %v350_v6, %v507_v18  ;;  %v511_v22 = vsub.f32 %v352_v8, %v507_v18 }
 0x185   : > { %v512_v25 = vsub.f32 %v421_v10, %v507_v18  ;;  %v513_v28 = vsub.f32 %v423_v12, %v507_v18  ;;  %v514_v31 = vsub.f32 %v492_v13, %v507_v18  ;;  %v515_v34 = vsub.f32 %v494_v16, %v507_v18 }
 0x186   : > { %v516_v23 = vmul.f32 %v508_v19, %v508_v19  ;;  %v517_v24 = vmul.f32 %v509_v20, %v509_v20  ;;  %v518_v26 = vmul.f32 %v510_v21, %v510_v21  ;;  %v519_v29 = vmul.f32 %v511_v22, %v511_v22 }
 0x187   : > { %v520_v32 = vmul.f32 %v512_v25, %v512_v25  ;;  %v521_v35 = vmul.f32 %v513_v28, %v513_v28  ;;  %v522_v37 = vmul.f32 %v514_v31, %v514_v31  ;;  %v523_v39 = vmul.f32 %v515_v34, %v515_v34 }
 0x188   : > { %v524_v27 = vadd.f32 %v517_v24, %v516_v23 }
 0x18a   : > { %v525_v30 = vadd.f32 %v524_v27, %v518_v26 }
 0x18c   : > { %v526_v33 = vadd.f32 %v525_v30, %v519_v29 }
 0x18e   : > { %v527_v36 = vadd.f32 %v526_v33, %v520_v32 }
 0x190   : > { %v528_v38 = vadd.f32 %v527_v36, %v521_v35 }
 0x192   : > { %v529_v40 = vadd.f32 %v528_v38, %v522_v37 }
 0x194   : > { %v530_v41 = vadd.f32 %v529_v40, %v523_v39 }
 0x196   : > { %531 = vadd.xlane.f32.xlu0 %v530_v41 }
 0x21f   : > { %v532_v42 = vpop.xlane.xlu0 %531 }
 0x220   : > { %v533_v43 = vmul.f32 0.0009765625, %v532_v42 }
 0x222   : > { %v534_v44 = vadd.f32 1e-05, %v533_v43 }
 0x224   : > { %641 = vrsqrt.f32 %v534_v44 }
 0x231   : > { %v642_v45 = vpop.eup %641 }
 0x232   : > { %v536_v46 = vmul.f32 %v642_v45, %v508_v19  ;;  %v537_v47 = vmul.f32 %v642_v45, %v509_v20  ;;  %v538_v48 = vmul.f32 %v642_v45, %v510_v21  ;;  %v539_v49 = vmul.f32 %v642_v45, %v511_v22 }
 0x233   : > { %v540_v50 = vmul.f32 %v642_v45, %v512_v25  ;;  %v541_v51 = vmul.f32 %v642_v45, %v513_v28  ;;  %v542_v52 = vmul.f32 %v642_v45, %v514_v31  ;;  %v543_v53 = vmul.f32 %v642_v45, %v515_v34 }
 0x234   : > { %v544_v54 = vmax.f32 %v536_v46, 0.0  ;;  %v545_v55 = vmax.f32 %v537_v47, 0.0  ;;  %v546_v56 = vmax.f32 %v538_v48, 0.0  ;;  %v547_v57 = vmax.f32 %v539_v49, 0.0 }
 0x235   : > { %v548_v58 = vmax.f32 %v540_v50, 0.0  ;;  %v549_v59 = vmax.f32 %v541_v51, 0.0  ;;  %v550_v60 = vmax.f32 %v542_v52, 0.0  ;;  %v551_v61 = vmax.f32 %v543_v53, 0.0 }
 0x236   : > { %552 = vst [vmem:[%s143_s20] sm:$0xff] %v544_v54  ;;  %553 = vst [vmem:[%s143_s20 + $0x8] sm:$0xff] %v545_v55 }
 0x237   : > { %554 = vst [vmem:[%s143_s20 + $0x10] sm:$0xff] %v546_v56  ;;  %555 = vst [vmem:[%s143_s20 + $0x18] sm:$0xff] %v547_v57 }
 0x238   : > { %556 = vst [vmem:[%s143_s20 + $0x20] sm:$0xff] %v548_v58  ;;  %557 = vst [vmem:[%s143_s20 + $0x28] sm:$0xff] %v549_v59 }
 0x239   : > { %558 = vst [vmem:[%s143_s20 + $0x30] sm:$0xff] %v550_v60  ;;  %559 = vst [vmem:[%s143_s20 + $0x38] sm:$0xff] %v551_v61 }
 0x23a PF: > { %s12_s9 = sadd.s32 1, %s649_s9  }
 0x23b   : > { %p9_p4 = scmp.ge.s32.totalorder %s12_s9, 4  }
 0x23d   :  { %11 = sbr.rel (!%p9_p4) target bundleno = 1 (0x1), region = 58 }

</bundles_post_ra>
